<compile_context>
chip_gen: v7x
topology: tpu7x:2x2x1
jax: 0.10.0
libtpu: 0.0.40
codegen_flags: <defaults>
</compile_context>

<pallas_src>
import jax
import jax.numpy as jnp
from jax.experimental import pallas as pl
from jax.experimental.pallas import tpu as pltpu


def actor_net_kernel(x_ref, w1_ref, b1_ref, w2_ref, b2_ref, out_ref):
    x = x_ref[...]                                     # [TB, S]
    # Layer 1: Linear + ReLU on the MXU (f32 accumulate).
    h = jnp.dot(x, w1_ref[...], preferred_element_type=jnp.float32)
    h = jnp.maximum(h + b1_ref[...], 0.0)              # [TB, H]
    # Layer 2: Linear on the MXU, store only the real output columns.
    o = jnp.dot(h, w2_ref[...], preferred_element_type=jnp.float32)
    out_ref[...] = (o + b2_ref[...]).astype(out_ref.dtype)   # [TB, O]


def _round_up(v, m):
    return ((v + m - 1) // m) * m


def actor_net_forward(x, w1, b1, w2, b2, *, block_b=2048):
    """x: [B, state_size] f32. Returns [B, out_filters] f32.

    w1: [state_size, l1_filters], b1: [1, l1_filters],
    w2: [l1_filters, out_filters], b2: [1, out_filters]
    (i.e. x @ W + b, equivalent to PyTorch's x @ W.T with its [out, in] layout).
    """
    B, S = x.shape
    H = w1.shape[1]
    O = w2.shape[1]

    # Batch tiling: TB is a multiple of 8 sublanes, capped at block_b. For
    # large batches ensure at least 2 grid steps so the "parallel" axis can
    # shard across both TensorCores on v7x (don't split tiny batches — each
    # grid step costs ~0.35 us).
    TB = min(block_b, _round_up(max(B, 1), 8))
    if B > 1024:
        half = _round_up((_round_up(B, 8) + 1) // 2, 8)
        TB = min(TB, half)
    B_pad = _round_up(B, TB)
    x_p = jnp.pad(x, ((0, B_pad - B), (0, 0))) if B_pad != B else x
    grid = (B_pad // TB,)

    out_padded = pl.pallas_call(
        actor_net_kernel,
        out_shape=jax.ShapeDtypeStruct((B_pad, O), jnp.float32),
        grid=grid,
        in_specs=[
            pl.BlockSpec((TB, S), lambda i: (i, 0)),   # batch tile (moves)
            pl.BlockSpec((S, H), lambda i: (0, 0)),    # resident weights
            pl.BlockSpec((1, H), lambda i: (0, 0)),
            pl.BlockSpec((H, O), lambda i: (0, 0)),
            pl.BlockSpec((1, O), lambda i: (0, 0)),
        ],
        out_specs=pl.BlockSpec((TB, O), lambda i: (i, 0)),
        compiler_params=pltpu.CompilerParams(
            dimension_semantics=("parallel",)),
        cost_estimate=pl.CostEstimate(
            flops=2 * B_pad * (S * H + H * O),
            transcendentals=0,
            bytes_accessed=4 * (B_pad * S + S * H + H
                                + H * O + O + B_pad * O)),
    )(x_p, w1, b1, w2, b2)

    return out_padded[:B]


def init_actor_net_params(key, state_size=4, l1_filters=16, out_filters=2):
    """PyTorch nn.Linear-style init: U[-1/sqrt(fan_in), +1/sqrt(fan_in)]."""
    k1, k2, k3, k4 = jax.random.split(key, 4)
    bound1 = 1.0 / jnp.sqrt(jnp.float32(state_size))
    bound2 = 1.0 / jnp.sqrt(jnp.float32(l1_filters))
    w1 = jax.random.uniform(k1, (state_size, l1_filters), jnp.float32, -bound1, bound1)
    b1 = jax.random.uniform(k2, (1, l1_filters), jnp.float32, -bound1, bound1)
    w2 = jax.random.uniform(k3, (l1_filters, out_filters), jnp.float32, -bound2, bound2)
    b2 = jax.random.uniform(k4, (1, out_filters), jnp.float32, -bound2, bound2)
    return w1, b1, w2, b2


if __name__ == "__main__":
    key = jax.random.PRNGKey(0)
    key_x, key_p, key_x2 = jax.random.split(key, 3)

    state_size, l1_filters, out_filters = 4, 16, 2
    w1, b1, w2, b2 = init_actor_net_params(
        key_p, state_size=state_size, l1_filters=l1_filters, out_filters=out_filters
    )

    # Small, single-tile case (batch = 8).
    batch = 8
    x = jax.random.normal(key_x, (batch, state_size), dtype=jnp.float32)
    out = jax.block_until_ready(actor_net_forward(x, w1, b1, w2, b2))
    ref = jnp.maximum(x @ w1 + b1, 0.0) @ w2 + b2
    assert out.shape == (batch, out_filters)
    assert jnp.allclose(out, ref, atol=1e-5, rtol=1e-5)

    # Multi-tile case with batch padding (exercises the batch grid + resident
    # weights without large arrays): B=40, TB=16 -> grid=(3,), B_pad=48.
    batch2 = 40
    x2 = jax.random.normal(key_x2, (batch2, state_size), dtype=jnp.float32)
    out2 = jax.block_until_ready(actor_net_forward(x2, w1, b1, w2, b2, block_b=16))
    ref2 = jnp.maximum(x2 @ w1 + b1, 0.0) @ w2 + b2
    assert out2.shape == (batch2, out_filters)
    assert jnp.allclose(out2, ref2, atol=1e-5, rtol=1e-5)

    print("KERNEL_OK")
</pallas_src>

<mosaic_0001>
module attributes {stable_mosaic.version = 11 : i64} {
  func.func @actor_net_kernel(%arg0: i32, %arg1: memref<8x4xf32, #tpu.memory_space<vmem>>, %arg2: memref<4x16xf32, #tpu.memory_space<vmem>>, %arg3: memref<1x16xf32, #tpu.memory_space<vmem>>, %arg4: memref<16x2xf32, #tpu.memory_space<vmem>>, %arg5: memref<1x2xf32, #tpu.memory_space<vmem>>, %arg6: memref<8x2xf32, #tpu.memory_space<vmem>>) attributes {dimension_semantics = [#tpu.dimension_semantics<parallel>], iteration_bounds = array<i64: 1>, scalar_prefetch = 0 : i64, scratch_operands = 0 : i64, tpu.core_type = #tpu.core_type<tc>, window_params = [{transform_indices = @transform_0, window_bounds = array<i64: 8, 4>}, {pipeline_mode = #tpu.pipeline_mode<synchronous>, transform_indices = @transform_1, window_bounds = array<i64: 4, 16>}, {pipeline_mode = #tpu.pipeline_mode<synchronous>, transform_indices = @transform_2, window_bounds = array<i64: 1, 16>}, {pipeline_mode = #tpu.pipeline_mode<synchronous>, transform_indices = @transform_3, window_bounds = array<i64: 16, 2>}, {pipeline_mode = #tpu.pipeline_mode<synchronous>, transform_indices = @transform_4, window_bounds = array<i64: 1, 2>}, {transform_indices = @transform_5, window_bounds = array<i64: 8, 2>}]} {
    %c0 = arith.constant 0 : index
    %c0_0 = arith.constant 0 : index
    %0 = vector.load %arg1[%c0, %c0_0] : memref<8x4xf32, #tpu.memory_space<vmem>>, vector<8x4xf32>
    %c0_1 = arith.constant 0 : index
    %c0_2 = arith.constant 0 : index
    %1 = vector.load %arg2[%c0_1, %c0_2] : memref<4x16xf32, #tpu.memory_space<vmem>>, vector<4x16xf32>
    %cst = arith.constant dense<0.000000e+00> : vector<8x16xf32>
    %2 = tpu.matmul %0, %1, %cst {dimension_numbers = #tpu.dot_dimension_numbers<[1], [0], [0], [1], [0, 0, 1, 1], [], []>} : vector<8x4xf32>, vector<4x16xf32>, vector<8x16xf32> -> vector<8x16xf32>
    %c0_3 = arith.constant 0 : index
    %c0_4 = arith.constant 0 : index
    %3 = vector.load %arg3[%c0_3, %c0_4] : memref<1x16xf32, #tpu.memory_space<vmem>>, vector<1x16xf32>
    %4 = vector.broadcast %3 : vector<1x16xf32> to vector<8x16xf32>
    %5 = arith.addf %2, %4 : vector<8x16xf32>
    %cst_5 = arith.constant 0.000000e+00 : f32
    %6 = vector.broadcast %cst_5 : f32 to vector<8x16xf32>
    %7 = arith.maximumf %5, %6 : vector<8x16xf32>
    %c0_6 = arith.constant 0 : index
    %c0_7 = arith.constant 0 : index
    %8 = vector.load %arg4[%c0_6, %c0_7] : memref<16x2xf32, #tpu.memory_space<vmem>>, vector<16x2xf32>
    %cst_8 = arith.constant dense<0.000000e+00> : vector<8x2xf32>
    %9 = tpu.matmul %7, %8, %cst_8 {dimension_numbers = #tpu.dot_dimension_numbers<[1], [0], [0], [1], [0, 0, 1, 1], [], []>} : vector<8x16xf32>, vector<16x2xf32>, vector<8x2xf32> -> vector<8x2xf32>
    %c0_9 = arith.constant 0 : index
    %c0_10 = arith.constant 0 : index
    %10 = vector.load %arg5[%c0_9, %c0_10] : memref<1x2xf32, #tpu.memory_space<vmem>>, vector<1x2xf32>
    %11 = vector.broadcast %10 : vector<1x2xf32> to vector<8x2xf32>
    %12 = arith.addf %9, %11 : vector<8x2xf32>
    %c0_11 = arith.constant 0 : index
    %c0_12 = arith.constant 0 : index
    %13 = vector.load %arg6[%c0_11, %c0_12] : memref<8x2xf32, #tpu.memory_space<vmem>>, vector<8x2xf32>
    tpu.vector_store %arg6[%c0_11, %c0_12], %12 {strides = array<i32>} : memref<8x2xf32, #tpu.memory_space<vmem>>, vector<8x2xf32>,
    return
  }
  func.func @transform_0(%arg0: i32) -> (i32, i32) {
    %c0_i32 = arith.constant 0 : i32
    %c0_i32_0 = arith.constant 0 : i32
    return %arg0, %c0_i32 : i32, i32
  }
  func.func @transform_1(%arg0: i32) -> (i32, i32) {
    %c0_i32 = arith.constant 0 : i32
    %c0_i32_0 = arith.constant 0 : i32
    %c0_i32_1 = arith.constant 0 : i32
    return %c0_i32, %c0_i32_0 : i32, i32
  }
  func.func @transform_2(%arg0: i32) -> (i32, i32) {
    %c0_i32 = arith.constant 0 : i32
    %c0_i32_0 = arith.constant 0 : i32
    %c0_i32_1 = arith.constant 0 : i32
    return %c0_i32, %c0_i32_0 : i32, i32
  }
  func.func @transform_3(%arg0: i32) -> (i32, i32) {
    %c0_i32 = arith.constant 0 : i32
    %c0_i32_0 = arith.constant 0 : i32
    %c0_i32_1 = arith.constant 0 : i32
    return %c0_i32, %c0_i32_0 : i32, i32
  }
  func.func @transform_4(%arg0: i32) -> (i32, i32) {
    %c0_i32 = arith.constant 0 : i32
    %c0_i32_0 = arith.constant 0 : i32
    %c0_i32_1 = arith.constant 0 : i32
    return %c0_i32, %c0_i32_0 : i32, i32
  }
  func.func @transform_5(%arg0: i32) -> (i32, i32) {
    %c0_i32 = arith.constant 0 : i32
    %c0_i32_0 = arith.constant 0 : i32
    return %arg0, %c0_i32 : i32, i32
  }
}

</mosaic_0001>

<bundles_post_ra>
// kernel: tpu_custom_call.1
= control target key start
LH: loop header
LB: loop body
LE: loop exit
PB: predicated region body
PF: predicated region fallthrough
CT: control target
= control target key end

     0   :  { %vm33_vm0 = vcmask 1043456   ;;  %vm29_vm1 = vcmask 31744   ;;  %v225_v0 = vmov 0.0   ;;  %vm226_vm2 = vmmov 0   ;;  %s279_s1 = inlined_call_operand.vmem [shape: f32[4,16], index: 1, kind: input, shape index: {}]   ;;  %s280_s0 = inlined_call_operand.vmem [shape: f32[8,4], index: 0, kind: input, shape index: {}]   ;;  %s281_s3 = inlined_call_operand.vmem [shape: f32[16,2], index: 3, kind: input, shape index: {}]   ;;  %s282_s2 = inlined_call_operand.vmem [shape: f32[1,16], index: 2, kind: input, shape index: {}]   ;;  %s283_s4 = inlined_call_operand.vmem [shape: f32[1,2], index: 4, kind: input, shape index: {}]   ;;  %s284_s5 = inlined_call_operand.vmem [shape: f32[8,2], index: 5, kind: output, shape index: {}]  }
   0x1   :  { %207 = vmatprep.subr.mxu0 %v225_v0  ;;  %v21_v1 = vld [vmem:[%s279_s1] sm:$0xf]  ;;  %209 = vmatprep.mubr.msk.f32.mxu0 %vm226_vm2, %v225_v0  ;;  %v109_v4 = vld [vmem:[%s281_s3 + $0x8] sm:$0xff]  ;;  %v227_v6 = vmov 0.0|0.0   ;;  %vm117_vm3 = vcmask 130048   ;;  %vm191_vm4 = vcmask 15360  }
   0x2   :  { %v20_v2 = vld [vmem:[%s280_s0] sm:$0xff]  ;;  %208 = vmatpush3.msk.msra.mxu0 %vm33_vm0, %v21_v1  ;;  %216 = vmatprep.mubr.msk.f32.mxu1 %vm226_vm2, %v225_v0 }
   0x3   :  { %210 = vmatmul.mubr.msk.f32.vlgmr.msra.gmra.mrb[0].mxu0 %vm29_vm1, %v20_v2  ;;  %v108_v3 = vld [vmem:[%s281_s3] sm:$0xff]  ;;  %219 = vmatprep.subr.bf16.mxu1 %v227_v6 }
   0x4   :  { %v220_v5 = vpack.c.bf16 %v109_v4, %v108_v3  ;;  %v197_v7 = vld [vmem:[%s282_s2] ss:$0 sm:$0xff] }
   0x5   :  { %v200_v12 = vld [vmem:[%s283_s4] ss:$0 sm:$0xff] }
   0x6   :  { %221 = vmatpush3.bf16.msra.mxu1 %v220_v5 }
  0xd6   :  { %v103_v8 = vpop.f32.mrb[0].mxu0 }
  0xd7   :  { %v104_v9 = vadd.f32 %v197_v7, %v103_v8  ;;  %v211_v10 = vpop.f32.mrb[1].mxu0 }
  0xd9   :  { %v107_v11 = vmax.f32 %v104_v9, 0.0 }
  0xdb   :  { %217 = vmatmul.mubr.msk.f32.vlgmr.msra.gmra.mrb[0].mxu1 %vm117_vm3, %v107_v11 }
 0x1ae   :  { %v187_v13 = vpop.f32.mrb[0].mxu1 }
 0x1af   :  { %v188_v14 = vadd.f32 %v200_v12, %v187_v13  ;;  %v218_v15 = vpop.f32.mrb[1].mxu1 }
 0x1b1   :  { %192 = vst.msk [vmem:[%s284_s5] sm:$0xff] %vm191_vm4, %v188_v14 }

</bundles_post_ra>
